<compile_context>
chip_gen: v7x
topology: tpu7x:2x2x1
jax: 0.10.0
libtpu: 0.0.40
codegen_flags: <defaults>
</compile_context>

<pallas_src>
import jax
import jax.numpy as jnp
from jax.experimental import pallas as pl
from jax.experimental.pallas import tpu as pltpu

IN_FEATURES = 768 * 2  # 1536


def _round_up(x, m):
    return ((x + m - 1) // m) * m


def _regression_kernel(x_ref, w_ref, b_ref, o_ref):
    # x_ref: [TB, 1536] VMEM tile of embeddings
    # w_ref: [1, 1536]  VMEM tile (Linear weight row, resident across grid steps)
    # b_ref: [1]        SMEM scalar (Linear bias)
    # o_ref: [TB, 1]    output tile
    x = x_ref[...].astype(jnp.float32)
    w = w_ref[...].astype(jnp.float32)            # [1, 1536], broadcasts over batch
    # Dropout (eval mode) == identity, so x goes straight into the linear head.
    prod = x * w                                  # VPU elementwise
    acc = jnp.sum(prod, axis=-1, keepdims=True)   # XLU lane reduction -> [TB, 1]
    o_ref[...] = (acc + b_ref[0]).astype(o_ref.dtype)


def mmodel_forward(embeddings, weight, bias, *, block_b=512, training=False):
    """embeddings: [B, 1536]; weight: [1, 1536]; bias: [1] -> logits: [B]"""
    # Training-mode dropout is intentionally unsupported here (inference kernel).
    assert not training, "training-mode dropout not implemented in this kernel"

    B, F = embeddings.shape
    assert F == IN_FEATURES
    assert weight.shape == (1, F)
    bias = bias.reshape(1)

    # Batch tile: multiple of 8, capped by block_b (sized for v5e/v6e/v7x
    # scoped-VMEM limits with double buffering), never larger than needed.
    tb = min(block_b, _round_up(B, 8))
    grid = (pl.cdiv(B, tb),)

    itemsize = jnp.dtype(embeddings.dtype).itemsize
    cost = pl.CostEstimate(
        flops=2 * B * F,
        transcendentals=0,
        bytes_accessed=B * F * itemsize + F * 4 + 4 + B * itemsize,
    )

    out = pl.pallas_call(
        _regression_kernel,
        out_shape=jax.ShapeDtypeStruct((B, 1), embeddings.dtype),
        grid_spec=pltpu.PrefetchScalarGridSpec(
            num_scalar_prefetch=0,
            grid=grid,
            in_specs=[
                # Batch-tiled embeddings: new tile each grid step (pipelined).
                pl.BlockSpec((tb, F), lambda i: (i, 0)),
                # Weight row: same block index every step -> fetched once.
                pl.BlockSpec((1, F), lambda i: (0, 0)),
                # Bias scalar lives in SMEM (no padded VMEM tile).
                pl.BlockSpec(memory_space=pltpu.MemorySpace.SMEM),
            ],
            out_specs=pl.BlockSpec((tb, 1), lambda i: (i, 0)),
        ),
        compiler_params=pltpu.CompilerParams(
            # Batch tiles are independent -> shard across TCs on v7x megacore.
            dimension_semantics=("parallel",),
        ),
        cost_estimate=cost,
    )(embeddings, weight, bias)

    return out[:, 0]  # squeeze(-1): [B, 1] -> [B]


if __name__ == "__main__":
    key = jax.random.PRNGKey(0)
    k_x, k_w, k_b = jax.random.split(key, 3)

    B = 8
    # Deterministic example input (small shape consistent with the module).
    x = jax.random.normal(k_x, (B, IN_FEATURES), dtype=jnp.float32)

    # nn.Linear default init: U(-1/sqrt(fan_in), 1/sqrt(fan_in))
    bound = 1.0 / (IN_FEATURES ** 0.5)
    weight = jax.random.uniform(k_w, (1, IN_FEATURES), jnp.float32, -bound, bound)
    bias = jax.random.uniform(k_b, (1,), jnp.float32, -bound, bound)

    logits = mmodel_forward(x, weight, bias)
    logits = jax.block_until_ready(logits)

    # Sanity check against plain-JAX reference (eval-mode dropout == identity).
    ref = (x @ weight.T + bias)[:, 0]
    assert logits.shape == (B,)
    assert jnp.allclose(logits, ref, atol=1e-4, rtol=1e-4)

    print("KERNEL_OK")
</pallas_src>

<mosaic_0001>
module attributes {stable_mosaic.version = 11 : i64} {
  func.func @_regression_kernel(%arg0: i32, %arg1: memref<8x1536xf32, #tpu.memory_space<vmem>>, %arg2: memref<1x1536xf32, #tpu.memory_space<vmem>>, %arg3: memref<1xf32, #tpu.memory_space<smem>>, %arg4: memref<8x1xf32, #tpu.memory_space<vmem>>) attributes {dimension_semantics = [#tpu.dimension_semantics<parallel>], iteration_bounds = array<i64: 1>, scalar_prefetch = 0 : i64, scratch_operands = 0 : i64, tpu.core_type = #tpu.core_type<tc>, window_params = [{transform_indices = @transform_0, window_bounds = array<i64: 8, 1536>}, {pipeline_mode = #tpu.pipeline_mode<synchronous>, transform_indices = @transform_1, window_bounds = array<i64: 1, 1536>}, {transform_indices = @transform_2, window_bounds = array<i64: 1>}, {transform_indices = @transform_3, window_bounds = array<i64: 8, 1>}]} {
    %c0 = arith.constant 0 : index
    %c0_0 = arith.constant 0 : index
    %0 = vector.load %arg1[%c0, %c0_0] : memref<8x1536xf32, #tpu.memory_space<vmem>>, vector<8x1536xf32>
    %c0_1 = arith.constant 0 : index
    %c0_2 = arith.constant 0 : index
    %1 = vector.load %arg2[%c0_1, %c0_2] : memref<1x1536xf32, #tpu.memory_space<vmem>>, vector<1x1536xf32>
    %2 = vector.broadcast %1 : vector<1x1536xf32> to vector<8x1536xf32>
    %3 = arith.mulf %0, %2 : vector<8x1536xf32>
    %cst = arith.constant dense<0.000000e+00> : vector<8xf32>
    %4 = vector.multi_reduction <add>, %3, %cst [1] : vector<8x1536xf32> to vector<8xf32>
    %5 = vector.shape_cast %4 : vector<8xf32> to vector<8x1xf32>
    %c0_3 = arith.constant 0 : index
    %6 = memref.load %arg3[%c0_3] : memref<1xf32, #tpu.memory_space<smem>>
    %7 = vector.broadcast %6 : f32 to vector<8x1xf32>
    %8 = arith.addf %5, %7 : vector<8x1xf32>
    %c0_4 = arith.constant 0 : index
    %c0_5 = arith.constant 0 : index
    %9 = vector.load %arg4[%c0_4, %c0_5] : memref<8x1xf32, #tpu.memory_space<vmem>>, vector<8x1xf32>
    tpu.vector_store %arg4[%c0_4, %c0_5], %8 {strides = array<i32>} : memref<8x1xf32, #tpu.memory_space<vmem>>, vector<8x1xf32>,
    return
  }
  func.func @transform_0(%arg0: i32) -> (i32, i32) {
    %c0_i32 = arith.constant 0 : i32
    %c0_i32_0 = arith.constant 0 : i32
    return %arg0, %c0_i32 : i32, i32
  }
  func.func @transform_1(%arg0: i32) -> (i32, i32) {
    %c0_i32 = arith.constant 0 : i32
    %c0_i32_0 = arith.constant 0 : i32
    %c0_i32_1 = arith.constant 0 : i32
    return %c0_i32, %c0_i32_0 : i32, i32
  }
  func.func @transform_2(%arg0: i32) -> i32 {
    %c0_i32 = arith.constant 0 : i32
    %c0_i32_0 = arith.constant 0 : i32
    return %c0_i32 : i32
  }
  func.func @transform_3(%arg0: i32) -> (i32, i32) {
    %c0_i32 = arith.constant 0 : i32
    %c0_i32_0 = arith.constant 0 : i32
    return %arg0, %c0_i32 : i32, i32
  }
}

</mosaic_0001>

<bundles_post_ra>
// kernel: tpu_custom_call.1
= control target key start
LH: loop header
LB: loop body
LE: loop exit
PB: predicated region body
PF: predicated region fallthrough
CT: control target
= control target key end

     0   :  { %9 = vsyncpa [#allocation4], 0  ;;  %s253_s0 = inlined_call_operand.hbm [shape: f32[8,1536], index: 0, kind: input, shape index: {}]   ;;  %s254_s1 = inlined_call_operand.hbm [shape: f32[1,1536], index: 1, kind: input, shape index: {}]   ;;  %s255_s2 = inlined_call_operand.<no memory space> [shape: f32[1], index: 2, kind: input, shape index: {}]   ;;  %s256_s3 = inlined_call_operand.vmem [shape: f32[8,1], index: 3, kind: output, shape index: {}]  }
   0x1   :  { %10 = vsyncpa [#allocation6], 0  ;;  %s201_s12 = smov [#allocation3]   ;;  %s202_s14 = smov [#allocation5]  }
   0x2   :  { %s17_s13 = sshll.u32 %s201_s12, 4  ;;  %s27_s15 = sshll.u32 %s202_s14, 4  ;;  %s18_s13 = int_to_ptr.vmem [resolvable:$true] %s17_s13  ;;  %s28_s15 = int_to_ptr.vmem [resolvable:$true] %s27_s15 }
   0x3   :  { %s153_s18 = scalar_lea.hbm %s253_s0, 1536 }
   0x4   :  { %p154_p0 = scmp.ne.s32.totalorder %s253_s0, %s153_s18  ;;  %p157_p1 = scmp.lt.u32.totalorder %s153_s18, %s253_s0 }
   0x6   :  { %p159_p2 = pnand %p157_p1, %p154_p0 }
   0x8   :  { %162 = shalt.err (!%p159_p2)
}
   0x9   :  { %s163_s23 = scalar_lea.vmem %s18_s13, 1536  ;;  %p168_p4 = scmp.lt.s32.totalorder %s18_s13, %s18_s13 }
   0xa   :  { %p164_p3 = scmp.ne.s32.totalorder %s18_s13, %s163_s23  ;;  %p169_p5 = scmp.lt.s32.totalorder %s163_s23, %s163_s23 }
   0xc   :  { %p170_p6 = por %p169_p5, %p168_p4 }
   0xe   :  { %p171_p7 = pnand %p170_p6, %p164_p3 }
  0x10   :  { %174 = shalt.err (!%p171_p7)
}
  0x11   :  { %20 = dma.hbm_to_vmem [thread:$0]  %s253_s0, 1536, %s18_s13, [#allocation4]  }
  0x12   :  { %s175_s28 = scalar_lea.hbm %s254_s1, 192 }
  0x13   :  { %p176_p8 = scmp.ne.s32.totalorder %s254_s1, %s175_s28  ;;  %p179_p9 = scmp.lt.u32.totalorder %s175_s28, %s254_s1 }
  0x15   :  { %p181_p10 = pnand %p179_p9, %p176_p8 }
  0x17   :  { %184 = shalt.err (!%p181_p10)
}
  0x18   :  { %s185_s6 = scalar_lea.vmem %s28_s15, 192  ;;  %p190_p12 = scmp.lt.s32.totalorder %s28_s15, %s28_s15 }
  0x19   :  { %p186_p11 = scmp.ne.s32.totalorder %s28_s15, %s185_s6  ;;  %p191_p13 = scmp.lt.s32.totalorder %s185_s6, %s185_s6 }
  0x1b   :  { %p192_p0 = por %p191_p13, %p190_p12 }
  0x1d   :  { %p193_p1 = pnand %p192_p0, %p186_p11 }
  0x1f   :  { %196 = shalt.err (!%p193_p1)
}
  0x20   :  { %30 = dma.hbm_to_vmem [thread:$0]  %s254_s1, 192, %s28_s15, [#allocation6]  }
  0x21   :  { %197 = dma.done.wait [#allocation4], 1536  }
  0x22   :  { %198 = vsyncadd [#allocation4], 4294965760 }
  0x23   :  { %199 = dma.done.wait [#allocation6], 192  }
  0x24   :  { %200 = vsyncadd [#allocation6], 4294967104  ;;  %v55_v0 = vlaneseq  ;;  %v51_v6 = vld [vmem:[#allocation5] sm:$0xff]  ;;  %v40_v8 = vld [vmem:[#allocation3 + $0x8] sm:$0xff]  ;;  %v141_v59 = vstv %s255_s2  ;;  %vm143_vm0 = vcmask 7168  }
  0x25   :  { %v39_v7 = vld [vmem:[#allocation3] sm:$0xff]  ;;  %v41_v13 = vld [vmem:[#allocation3 + $0x10] sm:$0xff]  ;;  %v42_v16 = vld [vmem:[#allocation3 + $0x18] sm:$0xff] }
  0x26   :  { %v56_v1 = vshrl.u32 %v55_v0, 7  ;;  %v43_v22 = vld [vmem:[#allocation3 + $0x20] sm:$0xff]  ;;  %v44_v27 = vld [vmem:[#allocation3 + $0x28] sm:$0xff]  ;;  %v45_v31 = vld [vmem:[#allocation3 + $0x30] sm:$0xff] }
  0x27   :  { %v52_v32 = vld [vmem:[#allocation5 + $0x8] sm:$0xf]  ;;  %v46_v36 = vld [vmem:[#allocation3 + $0x38] sm:$0xff]  ;;  %v47_v40 = vld [vmem:[#allocation3 + $0x40] sm:$0xff] }
  0x28   :  { %v57_v2 = vsub.s32 0, %v56_v1  ;;  %v61_v3 = vsub.s32 1, %v56_v1  ;;  %v65_v4 = vsub.s32 2, %v56_v1  ;;  %v69_v5 = vsub.s32 3, %v56_v1  ;;  %v48_v44 = vld [vmem:[#allocation3 + $0x48] sm:$0xff]  ;;  %v49_v48 = vld [vmem:[#allocation3 + $0x50] sm:$0xff] }
  0x29   :  { %v73_v12 = vsub.s32 4, %v56_v1  ;;  %v77_v15 = vsub.s32 5, %v56_v1  ;;  %v81_v20 = vsub.s32 6, %v56_v1  ;;  %v85_v24 = vsub.s32 7, %v56_v1  ;;  %v50_v52 = vld [vmem:[#allocation3 + $0x58] sm:$0xff] }
  0x2a   :  { %v58_v9 = vrot.slane %v51_v6, %v57_v2  ;;  %v62_v10 = vrot.slane %v51_v6, %v61_v3  ;;  %v66_v11 = vrot.slane %v51_v6, %v65_v4  ;;  %v70_v14 = vrot.slane %v51_v6, %v69_v5 }
  0x2b   :  { %v74_v19 = vrot.slane %v51_v6, %v73_v12  ;;  %v78_v23 = vrot.slane %v51_v6, %v77_v15  ;;  %v82_v28 = vrot.slane %v51_v6, %v81_v20  ;;  %v86_v33 = vrot.slane %v51_v6, %v85_v24 }
  0x2c   :  { %v115_v17 = vmul.f32 %v58_v9, %v39_v7  ;;  %v116_v18 = vmul.f32 %v62_v10, %v40_v8  ;;  %v117_v21 = vmul.f32 %v66_v11, %v41_v13  ;;  %v118_v25 = vmul.f32 %v70_v14, %v42_v16 }
  0x2d   :  { %v119_v29 = vmul.f32 %v74_v19, %v43_v22  ;;  %v120_v34 = vmul.f32 %v78_v23, %v44_v27  ;;  %v90_v37 = vrot.slane %v52_v32, %v57_v2  ;;  %v121_v38 = vmul.f32 %v82_v28, %v45_v31 }
  0x2e   :  { %v127_v26 = vadd.f32 %v116_v18, %v115_v17  ;;  %v94_v41 = vrot.slane %v52_v32, %v61_v3  ;;  %v122_v42 = vmul.f32 %v86_v33, %v46_v36  ;;  %v98_v45 = vrot.slane %v52_v32, %v65_v4 }
  0x2f   :  { %v123_v46 = vmul.f32 %v90_v37, %v47_v40  ;;  %v102_v49 = vrot.slane %v52_v32, %v69_v5 }
  0x30   :  { %v128_v30 = vadd.f32 %v127_v26, %v117_v21  ;;  %v124_v50 = vmul.f32 %v94_v41, %v48_v44  ;;  %v125_v53 = vmul.f32 %v98_v45, %v49_v48 }
  0x31   :  { %v126_v55 = vmul.f32 %v102_v49, %v50_v52 }
  0x32   :  { %v129_v35 = vadd.f32 %v128_v30, %v118_v25 }
  0x34   :  { %v130_v39 = vadd.f32 %v129_v35, %v119_v29 }
  0x36   :  { %v131_v43 = vadd.f32 %v130_v39, %v120_v34 }
  0x38   :  { %v132_v47 = vadd.f32 %v131_v43, %v121_v38 }
  0x3a   :  { %v133_v51 = vadd.f32 %v132_v47, %v122_v42 }
  0x3c   :  { %v134_v54 = vadd.f32 %v133_v51, %v123_v46 }
  0x3e   :  { %v135_v56 = vadd.f32 %v134_v54, %v124_v50 }
  0x40   :  { %v136_v57 = vadd.f32 %v135_v56, %v125_v53 }
  0x42   :  { %v137_v58 = vadd.f32 %v136_v57, %v126_v55 }
  0x44   :  { %138 = vadd.xlane.f32.xlu0 %v137_v58 }
  0xd1   :  { %v139_v60 = vpop.xlane.xlu0 %138 }
  0xd2   :  { %v142_v61 = vadd.f32 %v141_v59, %v139_v60 }
  0xd4   :  { %144 = vst.msk [vmem:[%s256_s3] sm:$0xff] %vm143_vm0, %v142_v61 }
  0xd5   :  { %149 = vsyncpa [#allocation4], 1 }
  0xd6   :  { %150 = vsyncpa [#allocation6], 1 }

</bundles_post_ra>
